<compile_context>
chip_gen: v7x
topology: tpu7x:2x2x1
jax: 0.10.0
libtpu: 0.0.40
codegen_flags: <defaults>
</compile_context>

<pallas_src>
import jax
import jax.numpy as jnp
from jax.experimental import pallas as pl
from jax.experimental.pallas import tpu as pltpu


def _pick_lane_tile(f, c_in, c_out, budget_bytes=8 * 1024 * 1024):
    """Largest lane tile (multiple of 128) whose double-buffered per-step
    working set (real+imag inputs and outputs, f32) fits in `budget_bytes`."""
    per_lane_bytes = 2 * 4 * 2 * (c_in + c_out)  # dbl-buffer * f32 * (in + out planes)
    tl = (budget_bytes // per_lane_bytes // 128) * 128
    tl = max(tl, 128)
    if tl >= f:
        return f  # full-extent block: always legal even if f % 128 != 0
    return tl


def _make_mix_kernel(c_in, c_out, use_mxu):
    def kernel(w_ref, xr_ref, xi_ref, yr_ref, yi_ref):
        # w_ref : (c_out, c_in)   -- tiny, grid-resident
        # x*_ref: (1, c_in, TL)   -- lanes = frequency bins (dense)
        # y*_ref: (1, c_out, TL)
        w = w_ref[...]
        xr = xr_ref[0]
        xi = xi_ref[0]
        if use_mxu:
            yr = jnp.dot(w, xr, preferred_element_type=jnp.float32)
            yi = jnp.dot(w, xi, preferred_element_type=jnp.float32)
        else:
            # Small channel counts: VPU broadcast-MAC, unrolled at trace time.
            # Keeps stores lane-dense and avoids MXU drain latency for a
            # (TL,<=16)x(<=16,<=16) push that would waste the systolic array.
            yr = w[:, 0:1] * xr[0:1, :]
            yi = w[:, 0:1] * xi[0:1, :]
            for ci in range(1, c_in):
                yr = yr + w[:, ci:ci + 1] * xr[ci:ci + 1, :]
                yi = yi + w[:, ci:ci + 1] * xi[ci:ci + 1, :]
        yr_ref[0] = yr.astype(yr_ref.dtype)
        yi_ref[0] = yi.astype(yi_ref.dtype)

    return kernel


def _pallas_channel_mix(w, xr, xi):
    """w: (C_out, C_in) f32; xr, xi: (N, C_in, F) f32 -> (yr, yi): (N, C_out, F)."""
    c_out, c_in = w.shape
    n, _, f = xr.shape
    tl = _pick_lane_tile(f, c_in, c_out)
    nf = pl.cdiv(f, tl)  # ragged edge handled by masked edge blocks
    use_mxu = (c_in > 16) or (c_out > 16)
    kernel = _make_mix_kernel(c_in, c_out, use_mxu)

    x_spec = pl.BlockSpec((1, c_in, tl), lambda b, j: (b, 0, j))
    y_spec = pl.BlockSpec((1, c_out, tl), lambda b, j: (b, 0, j))
    w_spec = pl.BlockSpec((c_out, c_in), lambda b, j: (0, 0))

    # Advisory cost hint (real + imag planes).
    cost = pl.CostEstimate(
        flops=2 * 2 * n * c_out * c_in * f,
        transcendentals=0,
        bytes_accessed=4 * (2 * n * c_in * f + 2 * n * c_out * f + c_in * c_out),
    )

    return pl.pallas_call(
        kernel,
        out_shape=(
            jax.ShapeDtypeStruct((n, c_out, f), jnp.float32),
            jax.ShapeDtypeStruct((n, c_out, f), jnp.float32),
        ),
        grid_spec=pltpu.PrefetchScalarGridSpec(
            num_scalar_prefetch=0,
            grid=(n, nf),
            in_specs=[w_spec, x_spec, x_spec],
            out_specs=(y_spec, y_spec),
        ),
        compiler_params=pltpu.CompilerParams(
            dimension_semantics=("parallel", "parallel"),
            # Tile picker budgets ~8 MiB of double-buffered blocks; 32 MiB
            # scoped limit leaves ample headroom on v5e/v6e/v7x.
            vmem_limit_bytes=32 * 1024 * 1024,
        ),
        cost_estimate=cost,
    )(w, xr, xi)


@jax.jit
def freqconv_1x1_fftifft(x, weight):
    """
    x:      (N, C_in, H, W) float32   (NCHW, matching PyTorch)
    weight: (C_out, C_in)   float32   (nn.Linear weight layout)
    returns (N, C_out, H, W) float32
    """
    n, c_in, h, w = x.shape
    c_out = weight.shape[0]

    # TODO(synk): FFT/IFFT have no Pallas TPU primitive; done in plain JAX.
    # rfft2 is exactly equivalent here: x and weight are real, so the spectrum
    # stays Hermitian through the channel mix and real(ifft2) == irfft2(half).
    xf = jnp.fft.rfft2(x, axes=(-2, -1))          # (N, C_in, H, W//2+1) complex64
    wh = w // 2 + 1
    f = h * wh

    # Contiguous reshape only (no transpose): frequency bins land on lanes.
    xr = xf.real.reshape(n, c_in, f).astype(jnp.float32)
    xi = xf.imag.reshape(n, c_in, f).astype(jnp.float32)
    wt = weight.astype(jnp.float32)               # (C_out, C_in)

    yr, yi = _pallas_channel_mix(wt, xr, xi)      # (N, C_out, F) each

    yc = (yr + 1j * yi).astype(jnp.complex64).reshape(n, c_out, h, wh)
    return jnp.fft.irfft2(yc, s=(h, w), axes=(-2, -1)).astype(jnp.float32)


if __name__ == "__main__":
    # Small shapes consistent with the module: batch=2, in=4, out=4, 16x16.
    N, C_IN, C_OUT, H, W = 2, 4, 4, 16, 16

    key = jax.random.PRNGKey(0)
    kx, kw = jax.random.split(key)
    x = jax.random.normal(kx, (N, C_IN, H, W), dtype=jnp.float32)

    # Deterministic nn.Linear-style init: U(-1/sqrt(in), 1/sqrt(in)).
    bound = 1.0 / jnp.sqrt(jnp.float32(C_IN))
    weight = jax.random.uniform(
        kw, (C_OUT, C_IN), dtype=jnp.float32, minval=-bound, maxval=bound
    )

    out = freqconv_1x1_fftifft(x, weight)
    jax.block_until_ready(out)

    # Pure-JAX reference mirroring the PyTorch module (full fft2/ifft2 path).
    xf = jnp.fft.fft2(x, axes=(-2, -1))
    ref_r = jnp.einsum("nchw,oc->nohw", xf.real, weight)
    ref_i = jnp.einsum("nchw,oc->nohw", xf.imag, weight)
    ref = jnp.fft.ifft2(ref_r + 1j * ref_i, axes=(-2, -1)).real

    assert out.shape == (N, C_OUT, H, W), out.shape
    assert jnp.allclose(out, ref, atol=1e-4, rtol=1e-4), (
        float(jnp.max(jnp.abs(out - ref)))
    )
    print("KERNEL_OK")
</pallas_src>

<mosaic_0001>
module attributes {stable_mosaic.version = 11 : i64} {
  func.func @kernel(%arg0: i32, %arg1: i32, %arg2: memref<4x4xf32, #tpu.memory_space<vmem>>, %arg3: memref<1x4x144xf32, #tpu.memory_space<vmem>>, %arg4: memref<1x4x144xf32, #tpu.memory_space<vmem>>, %arg5: memref<1x4x144xf32, #tpu.memory_space<vmem>>, %arg6: memref<1x4x144xf32, #tpu.memory_space<vmem>>) attributes {dimension_semantics = [#tpu.dimension_semantics<parallel>, #tpu.dimension_semantics<parallel>], iteration_bounds = array<i64: 2, 1>, scalar_prefetch = 0 : i64, scratch_operands = 0 : i64, tpu.core_type = #tpu.core_type<tc>, window_params = [{pipeline_mode = #tpu.pipeline_mode<synchronous>, transform_indices = @transform_0, window_bounds = array<i64: 4, 4>}, {transform_indices = @transform_1, window_bounds = array<i64: 1, 4, 144>}, {transform_indices = @transform_2, window_bounds = array<i64: 1, 4, 144>}, {transform_indices = @transform_3, window_bounds = array<i64: 1, 4, 144>}, {transform_indices = @transform_4, window_bounds = array<i64: 1, 4, 144>}]} {
    %c0 = arith.constant 0 : index
    %c0_0 = arith.constant 0 : index
    %0 = vector.load %arg2[%c0, %c0_0] : memref<4x4xf32, #tpu.memory_space<vmem>>, vector<4x4xf32>
    %c0_1 = arith.constant 0 : index
    %c0_2 = arith.constant 0 : index
    %c0_3 = arith.constant 0 : index
    %1 = vector.load %arg3[%c0_1, %c0_2, %c0_3] : memref<1x4x144xf32, #tpu.memory_space<vmem>>, vector<1x4x144xf32>
    %2 = vector.shape_cast %1 : vector<1x4x144xf32> to vector<4x144xf32>
    %c0_4 = arith.constant 0 : index
    %c0_5 = arith.constant 0 : index
    %c0_6 = arith.constant 0 : index
    %3 = vector.load %arg4[%c0_4, %c0_5, %c0_6] : memref<1x4x144xf32, #tpu.memory_space<vmem>>, vector<1x4x144xf32>
    %4 = vector.shape_cast %3 : vector<1x4x144xf32> to vector<4x144xf32>
    %5 = vector.extract_strided_slice %0 {offsets = [0, 0], sizes = [4, 1], strides = [1, 1]} : vector<4x4xf32> to vector<4x1xf32>
    %6 = vector.extract_strided_slice %2 {offsets = [0, 0], sizes = [1, 144], strides = [1, 1]} : vector<4x144xf32> to vector<1x144xf32>
    %7 = vector.broadcast %5 : vector<4x1xf32> to vector<4x144xf32>
    %8 = vector.broadcast %6 : vector<1x144xf32> to vector<4x144xf32>
    %9 = arith.mulf %7, %8 : vector<4x144xf32>
    %10 = vector.extract_strided_slice %0 {offsets = [0, 0], sizes = [4, 1], strides = [1, 1]} : vector<4x4xf32> to vector<4x1xf32>
    %11 = vector.extract_strided_slice %4 {offsets = [0, 0], sizes = [1, 144], strides = [1, 1]} : vector<4x144xf32> to vector<1x144xf32>
    %12 = vector.broadcast %10 : vector<4x1xf32> to vector<4x144xf32>
    %13 = vector.broadcast %11 : vector<1x144xf32> to vector<4x144xf32>
    %14 = arith.mulf %12, %13 : vector<4x144xf32>
    %15 = vector.extract_strided_slice %0 {offsets = [0, 1], sizes = [4, 1], strides = [1, 1]} : vector<4x4xf32> to vector<4x1xf32>
    %16 = vector.extract_strided_slice %2 {offsets = [1, 0], sizes = [1, 144], strides = [1, 1]} : vector<4x144xf32> to vector<1x144xf32>
    %17 = vector.broadcast %15 : vector<4x1xf32> to vector<4x144xf32>
    %18 = vector.broadcast %16 : vector<1x144xf32> to vector<4x144xf32>
    %19 = arith.mulf %17, %18 : vector<4x144xf32>
    %20 = arith.addf %9, %19 : vector<4x144xf32>
    %21 = vector.extract_strided_slice %0 {offsets = [0, 1], sizes = [4, 1], strides = [1, 1]} : vector<4x4xf32> to vector<4x1xf32>
    %22 = vector.extract_strided_slice %4 {offsets = [1, 0], sizes = [1, 144], strides = [1, 1]} : vector<4x144xf32> to vector<1x144xf32>
    %23 = vector.broadcast %21 : vector<4x1xf32> to vector<4x144xf32>
    %24 = vector.broadcast %22 : vector<1x144xf32> to vector<4x144xf32>
    %25 = arith.mulf %23, %24 : vector<4x144xf32>
    %26 = arith.addf %14, %25 : vector<4x144xf32>
    %27 = vector.extract_strided_slice %0 {offsets = [0, 2], sizes = [4, 1], strides = [1, 1]} : vector<4x4xf32> to vector<4x1xf32>
    %28 = vector.extract_strided_slice %2 {offsets = [2, 0], sizes = [1, 144], strides = [1, 1]} : vector<4x144xf32> to vector<1x144xf32>
    %29 = vector.broadcast %27 : vector<4x1xf32> to vector<4x144xf32>
    %30 = vector.broadcast %28 : vector<1x144xf32> to vector<4x144xf32>
    %31 = arith.mulf %29, %30 : vector<4x144xf32>
    %32 = arith.addf %20, %31 : vector<4x144xf32>
    %33 = vector.extract_strided_slice %0 {offsets = [0, 2], sizes = [4, 1], strides = [1, 1]} : vector<4x4xf32> to vector<4x1xf32>
    %34 = vector.extract_strided_slice %4 {offsets = [2, 0], sizes = [1, 144], strides = [1, 1]} : vector<4x144xf32> to vector<1x144xf32>
    %35 = vector.broadcast %33 : vector<4x1xf32> to vector<4x144xf32>
    %36 = vector.broadcast %34 : vector<1x144xf32> to vector<4x144xf32>
    %37 = arith.mulf %35, %36 : vector<4x144xf32>
    %38 = arith.addf %26, %37 : vector<4x144xf32>
    %39 = vector.extract_strided_slice %0 {offsets = [0, 3], sizes = [4, 1], strides = [1, 1]} : vector<4x4xf32> to vector<4x1xf32>
    %40 = vector.extract_strided_slice %2 {offsets = [3, 0], sizes = [1, 144], strides = [1, 1]} : vector<4x144xf32> to vector<1x144xf32>
    %41 = vector.broadcast %39 : vector<4x1xf32> to vector<4x144xf32>
    %42 = vector.broadcast %40 : vector<1x144xf32> to vector<4x144xf32>
    %43 = arith.mulf %41, %42 : vector<4x144xf32>
    %44 = arith.addf %32, %43 : vector<4x144xf32>
    %45 = vector.extract_strided_slice %0 {offsets = [0, 3], sizes = [4, 1], strides = [1, 1]} : vector<4x4xf32> to vector<4x1xf32>
    %46 = vector.extract_strided_slice %4 {offsets = [3, 0], sizes = [1, 144], strides = [1, 1]} : vector<4x144xf32> to vector<1x144xf32>
    %47 = vector.broadcast %45 : vector<4x1xf32> to vector<4x144xf32>
    %48 = vector.broadcast %46 : vector<1x144xf32> to vector<4x144xf32>
    %49 = arith.mulf %47, %48 : vector<4x144xf32>
    %50 = arith.addf %38, %49 : vector<4x144xf32>
    %c0_7 = arith.constant 0 : index
    %c0_8 = arith.constant 0 : index
    %c0_9 = arith.constant 0 : index
    %51 = vector.load %arg5[%c0_7, %c0_8, %c0_9] : memref<1x4x144xf32, #tpu.memory_space<vmem>>, vector<1x4x144xf32>
    %52 = vector.shape_cast %51 : vector<1x4x144xf32> to vector<4x144xf32>
    %53 = vector.shape_cast %44 : vector<4x144xf32> to vector<1x4x144xf32>
    tpu.vector_store %arg5[%c0_7, %c0_8, %c0_9], %53 {strides = array<i32>} : memref<1x4x144xf32, #tpu.memory_space<vmem>>, vector<1x4x144xf32>,
    %c0_10 = arith.constant 0 : index
    %c0_11 = arith.constant 0 : index
    %c0_12 = arith.constant 0 : index
    %54 = vector.load %arg6[%c0_10, %c0_11, %c0_12] : memref<1x4x144xf32, #tpu.memory_space<vmem>>, vector<1x4x144xf32>
    %55 = vector.shape_cast %54 : vector<1x4x144xf32> to vector<4x144xf32>
    %56 = vector.shape_cast %50 : vector<4x144xf32> to vector<1x4x144xf32>
    tpu.vector_store %arg6[%c0_10, %c0_11, %c0_12], %56 {strides = array<i32>} : memref<1x4x144xf32, #tpu.memory_space<vmem>>, vector<1x4x144xf32>,
    return
  }
  func.func @transform_0(%arg0: i32, %arg1: i32) -> (i32, i32) {
    %c0_i32 = arith.constant 0 : i32
    %c0_i32_0 = arith.constant 0 : i32
    %c0_i32_1 = arith.constant 0 : i32
    return %c0_i32, %c0_i32_0 : i32, i32
  }
  func.func @transform_1(%arg0: i32, %arg1: i32) -> (i32, i32, i32) {
    %c0_i32 = arith.constant 0 : i32
    %c0_i32_0 = arith.constant 0 : i32
    return %arg0, %c0_i32, %arg1 : i32, i32, i32
  }
  func.func @transform_2(%arg0: i32, %arg1: i32) -> (i32, i32, i32) {
    %c0_i32 = arith.constant 0 : i32
    %c0_i32_0 = arith.constant 0 : i32
    return %arg0, %c0_i32, %arg1 : i32, i32, i32
  }
  func.func @transform_3(%arg0: i32, %arg1: i32) -> (i32, i32, i32) {
    %c0_i32 = arith.constant 0 : i32
    %c0_i32_0 = arith.constant 0 : i32
    return %arg0, %c0_i32, %arg1 : i32, i32, i32
  }
  func.func @transform_4(%arg0: i32, %arg1: i32) -> (i32, i32, i32) {
    %c0_i32 = arith.constant 0 : i32
    %c0_i32_0 = arith.constant 0 : i32
    return %arg0, %c0_i32, %arg1 : i32, i32, i32
  }
}

</mosaic_0001>

<bundles_post_ra>
// kernel: reverse.1
= control target key start
LH: loop header
LB: loop body
LE: loop exit
PB: predicated region body
PF: predicated region fallthrough
CT: control target
= control target key end

     0   :  { %v71_v3 = vlaneseq  ;;  %v64_v9 = vld [vmem:[#allocation0 + $0x7] ss:$-1 sm:$0xff]  ;;  %v78_v12 = vld [vmem:[#allocation0 + $0x17] ss:$-1 sm:$0xff]  ;;  %s329_s0 = inlined_call_operand.vmem [shape: f32[2,4,16,7], index: 0, kind: input, shape index: {}]   ;;  %s330_s1 = inlined_call_operand.vmem [shape: f32[2,4,16,7], index: 1, kind: output, shape index: {}]  }
   0x1   :  { %v44_v0 = vld [vmem:[%s329_s0] sm:$0xff]  ;;  %v46_v1 = vld [vmem:[%s329_s0 + $0x8] sm:$0xff]  ;;  %v48_v2 = vld [vmem:[%s329_s0 + $0x10] sm:$0xff]  ;;  %v65_v10 = vrot.slane %v64_v9, 1  ;;  %v79_v14 = vrot.slane %v78_v12, 1 }
   0x2   :  { %45 = vst [vmem:[#allocation0 + $0x8] sm:$0xff] %v44_v0  ;;  %47 = vst [vmem:[#allocation0 + $0x18] sm:$0xff] %v46_v1  ;;  %v50_v4 = vld [vmem:[%s329_s0 + $0x18] sm:$0xff]  ;;  %v52_v5 = vld [vmem:[%s329_s0 + $0x20] sm:$0xff]  ;;  %v72_v11 = vshrl.u32 %v71_v3, 7 }
   0x3   :  { %49 = vst [vmem:[#allocation0 + $0x28] sm:$0xff] %v48_v2  ;;  %v54_v6 = vld [vmem:[%s329_s0 + $0x28] sm:$0xff]  ;;  %51 = vst [vmem:[#allocation0 + $0x38] sm:$0xff] %v50_v4  ;;  %v56_v7 = vld [vmem:[%s329_s0 + $0x30] sm:$0xff] }
   0x4   :  { %53 = vst [vmem:[#allocation0 + $0x48] sm:$0xff] %v52_v5  ;;  %55 = vst [vmem:[#allocation0 + $0x58] sm:$0xff] %v54_v6  ;;  %v58_v8 = vld [vmem:[%s329_s0 + $0x38] sm:$0xff]  ;;  %v92_v13 = vld [vmem:[#allocation0 + $0x27] ss:$-1 sm:$0xff]  ;;  %vm73_vm0 = vcmp.lt.s32.totalorder %v72_v11, 7 }
   0x5   :  { %57 = vst [vmem:[#allocation0 + $0x68] sm:$0xff] %v56_v7  ;;  %59 = vst [vmem:[#allocation0 + $0x78] sm:$0xff] %v58_v8  ;;  %v93_v15 = vrot.slane %v92_v13, 1  ;;  %v106_v16 = vld [vmem:[#allocation0 + $0x37] ss:$-1 sm:$0xff] }
   0x6   :  { %66 = vst [vmem:[#allocation1] sm:$0xff] %v65_v10  ;;  %v107_v17 = vrot.slane %v106_v16, 1  ;;  %v120_v18 = vld [vmem:[#allocation0 + $0x47] ss:$-1 sm:$0xff]  ;;  %v134_v19 = vld [vmem:[#allocation0 + $0x57] ss:$-1 sm:$0xff] }
   0x7   :  { %80 = vst [vmem:[#allocation1 + $0x8] sm:$0xff] %v79_v14  ;;  %94 = vst [vmem:[#allocation1 + $0x10] sm:$0xff] %v93_v15  ;;  %v121_v20 = vrot.slane %v120_v18, 1  ;;  %v135_v21 = vrot.slane %v134_v19, 1  ;;  %v148_v22 = vld [vmem:[#allocation0 + $0x67] ss:$-1 sm:$0xff] }
   0x8   :  { %v162_v23 = vld [vmem:[#allocation0 + $0x77] ss:$-1 sm:$0xff]  ;;  %108 = vst [vmem:[#allocation1 + $0x18] sm:$0xff] %v107_v17  ;;  %v149_v24 = vrot.slane %v148_v22, 1 }
   0x9   :  { %v163_v25 = vrot.slane %v162_v23, 1  ;;  %v69_v26 = vld [vmem:[#allocation0 + $0xf] ss:$-1 sm:$0xff]  ;;  %v83_v27 = vld [vmem:[#allocation0 + $0x1f] ss:$-1 sm:$0xff]  ;;  %122 = vst [vmem:[#allocation1 + $0x20] sm:$0xff] %v121_v20 }
   0xa   :  { %v97_v28 = vld [vmem:[#allocation0 + $0x2f] ss:$-1 sm:$0xff]  ;;  %136 = vst [vmem:[#allocation1 + $0x28] sm:$0xff] %v135_v21  ;;  %v70_v29 = vrot.slane %v69_v26, 1  ;;  %v84_v30 = vrot.slane %v83_v27, 1  ;;  %150 = vst [vmem:[#allocation1 + $0x30] sm:$0xff] %v149_v24 }
   0xb   :  { %v98_v31 = vrot.slane %v97_v28, 1  ;;  %v111_v32 = vld [vmem:[#allocation0 + $0x3f] ss:$-1 sm:$0xff]  ;;  %164 = vst [vmem:[#allocation1 + $0x38] sm:$0xff] %v163_v25  ;;  %v125_v34 = vld [vmem:[#allocation0 + $0x4f] ss:$-1 sm:$0xff] }
   0xc   :  { %v112_v33 = vrot.slane %v111_v32, 1  ;;  %v139_v35 = vld [vmem:[#allocation0 + $0x5f] ss:$-1 sm:$0xff]  ;;  %74 = vst.msk [vmem:[#allocation1] sm:$0xff] %vm73_vm0, %v70_v29  ;;  %88 = vst.msk [vmem:[#allocation1 + $0x8] sm:$0xff] %vm73_vm0, %v84_v30  ;;  %v126_v36 = vrot.slane %v125_v34, 1 }
   0xd   :  { %102 = vst.msk [vmem:[#allocation1 + $0x10] sm:$0xff] %vm73_vm0, %v98_v31  ;;  %v140_v37 = vrot.slane %v139_v35, 1  ;;  %v153_v38 = vld [vmem:[#allocation0 + $0x6f] ss:$-1 sm:$0xff]  ;;  %v167_v39 = vld [vmem:[#allocation0 + $0x7f] ss:$-1 sm:$0xff] }
   0xe   :  { %116 = vst.msk [vmem:[#allocation1 + $0x18] sm:$0xff] %vm73_vm0, %v112_v33  ;;  %v154_v40 = vrot.slane %v153_v38, 1  ;;  %v168_v41 = vrot.slane %v167_v39, 1  ;;  %130 = vst.msk [vmem:[#allocation1 + $0x20] sm:$0xff] %vm73_vm0, %v126_v36 }
   0xf   :  { %144 = vst.msk [vmem:[#allocation1 + $0x28] sm:$0xff] %vm73_vm0, %v140_v37 }
  0x10   :  { %158 = vst.msk [vmem:[#allocation1 + $0x30] sm:$0xff] %vm73_vm0, %v154_v40  ;;  %172 = vst.msk [vmem:[#allocation1 + $0x38] sm:$0xff] %vm73_vm0, %v168_v41 }
  0x13   :  { %v214_v42 = vld [vmem:[#allocation1] sm:$0xff]  ;;  %v216_v43 = vld [vmem:[#allocation1 + $0x8] sm:$0xff] }
  0x14   :  { %v218_v44 = vld [vmem:[#allocation1 + $0x10] sm:$0xff]  ;;  %215 = vst [vmem:[%s330_s1] sm:$0xff] %v214_v42  ;;  %217 = vst [vmem:[%s330_s1 + $0x8] sm:$0xff] %v216_v43 }
  0x15   :  { %219 = vst [vmem:[%s330_s1 + $0x10] sm:$0xff] %v218_v44  ;;  %v220_v45 = vld [vmem:[#allocation1 + $0x18] sm:$0xff]  ;;  %v222_v46 = vld [vmem:[#allocation1 + $0x20] sm:$0xff] }
  0x16   :  { %221 = vst [vmem:[%s330_s1 + $0x18] sm:$0xff] %v220_v45  ;;  %v224_v47 = vld [vmem:[#allocation1 + $0x28] sm:$0xff]  ;;  %223 = vst [vmem:[%s330_s1 + $0x20] sm:$0xff] %v222_v46 }
  0x17   :  { %225 = vst [vmem:[%s330_s1 + $0x28] sm:$0xff] %v224_v47  ;;  %v226_v48 = vld [vmem:[#allocation1 + $0x30] sm:$0xff]  ;;  %v228_v49 = vld [vmem:[#allocation1 + $0x38] sm:$0xff] }
  0x18   :  { %227 = vst [vmem:[%s330_s1 + $0x30] sm:$0xff] %v226_v48  ;;  %229 = vst [vmem:[%s330_s1 + $0x38] sm:$0xff] %v228_v49 }

// kernel: freqconv_1x1_fftifft.1
= control target key start
LH: loop header
LB: loop body
LE: loop exit
PB: predicated region body
PF: predicated region fallthrough
CT: control target
= control target key end

     0   :  { %s764_s15 = smov 0   ;;  %s766_s16 = smov 0   ;;  %s812_s0 = inlined_call_operand.vmem [shape: f32[4,4], index: 0, kind: input, shape index: {}]   ;;  %s813_s1 = inlined_call_operand.vmem [shape: f32[2,4,144], index: 1, kind: input, shape index: {}]   ;;  %s814_s2 = inlined_call_operand.vmem [shape: f32[2,4,144], index: 2, kind: input, shape index: {}]   ;;  %s815_s3 = inlined_call_operand.vmem [shape: f32[2,4,144], index: 3, kind: output, shape index: {0}]   ;;  %s816_s4 = inlined_call_operand.vmem [shape: f32[2,4,144], index: 4, kind: output, shape index: {1}]  }
   0x1   :  { %s768_s17 = smov 0  }
   0x2 LB: > { %s27_s18 = sadd.s32 1, %s729_s16  ;;  %p663_p0 = scmp.ge.s32.totalorder %s733_s17, 1  ;;  %s733_s17 = sphi %s768_s17, %s15_s17   ;;  %s729_s16 = sphi %s766_s16, %s818_s16   ;;  %s725_s15 = sphi %s764_s15, %s817_s15  }
   0x3   : > { %p29_p1 = scmp.ge.s32.totalorder %s27_s18, 2  ;;  %p205_p2 = scmp.lt.s32.totalorder %s733_s17, 3 }
   0x5   : > { %s820_s18 = smov (%p29_p1, %s27_s18), 0  ;;  %p206_p3 = pnand %p663_p0, %p205_p2 }
   0x6   : > { %v297_v0 = vld [vmem:[%s812_s0] sm:$0xf] (!%p206_p3)  ;;  %v735_v1 = vmov (!%p206_p3), 0   ;;  %v736_v2 = vmov (!%p206_p3), 2   ;;  %v737_v3 = vmov (!%p206_p3), 1   ;;  %v738_v4 = vmov (!%p206_p3), 3  }
   0x7   : > { %209 = sbr.rel (%p206_p3) target bundleno = 152 (0x98), region = 32  ;;  %706 = vset.pattern.permute.xlu0 (!%p206_p3), %v735_v1  ;;  %708 = vset.pattern.permute.xlu1 (!%p206_p3), %v736_v2  ;;  %p258_p4 = scmp.lt.s32.totalorder (!%p206_p3), %s725_s15, 1  ;;  %v306_v5 = vlaneseq (!%p206_p3)  ;;  %vm495_vm0 = vcmask (!%p206_p3), 1043456   ;;  %vm496_vm1 = vcmask (!%p206_p3), 130052  }
   0x8   : > { %302 = vperm.xlu0 (!%p206_p3), %706, %v297_v0   ;;  %396 = vperm.xlu1 (!%p206_p3), %708, %v297_v0   ;;  %vm497_vm2 = vmor (!%p206_p3), %vm496_vm1, %vm495_vm0 }
   0x9   : > { %v307_v6 = vshrl.u32 (!%p206_p3), %v306_v5, 7 }
   0xb   : > { %v308_v7 = vsub.s32 (!%p206_p3), 0, %v307_v6  ;;  %v312_v8 = vsub.s32 (!%p206_p3), 4, %v307_v6  ;;  %v401_v11 = vsub.s32 (!%p206_p3), 2, %v307_v6  ;;  %v405_v12 = vsub.s32 (!%p206_p3), 6, %v307_v6 }
   0xc   : > { %707 = vset.pattern.permute.xlu0 (!%p206_p3), %v737_v3  ;;  %709 = vset.pattern.permute.xlu1 (!%p206_p3), %v738_v4  ;;  %v353_v13 = vsub.s32 (!%p206_p3), 1, %v307_v6  ;;  %v357_v14 = vsub.s32 (!%p206_p3), 5, %v307_v6  ;;  %v449_v15 = vsub.s32 (!%p206_p3), 3, %v307_v6  ;;  %v453_v16 = vsub.s32 (!%p206_p3), 7, %v307_v6 }
   0xd   : > { %348 = vperm.xlu0 (!%p206_p3), %707, %v297_v0   ;;  %444 = vperm.xlu1 (!%p206_p3), %709, %v297_v0  }
   0xe   : > { %s822_s15 = smov (!%p258_p4, %s725_s15), 1 }
   0xf   : > { %s785_s21 = sshll.u32 %s822_s15, 3 }
  0x10   : > { %s265_s24 = scalar_lea.vmem %s813_s1, %s785_s21  ;;  %s275_s27 = scalar_lea.vmem %s814_s2, %s785_s21 }
  0x11   : > { %710 = vset.pattern.permute.xlu0 %v738_v4  ;;  %v298_v9 = vld [vmem:[%s265_s24] sm:$0xff]  ;;  %s285_s30 = scalar_lea.vmem %s815_s3, %s785_s21  ;;  %s295_s7 = scalar_lea.vmem %s816_s4, %s785_s21 }
  0x12   : > { %v299_v10 = vld [vmem:[%s275_s27] sm:$0xff]  ;;  %v309_v17 = vrot.slane %v298_v9, %v308_v7  ;;  %v313_v18 = vrot.slane %v298_v9, %v312_v8  ;;  %v402_v21 = vrot.slane %v298_v9, %v401_v11  ;;  %v406_v22 = vrot.slane %v298_v9, %v405_v12 }
  0x13   : > { %v330_v19 = vrot.slane %v299_v10, %v308_v7  ;;  %v334_v20 = vrot.slane %v299_v10, %v312_v8  ;;  %v424_v23 = vrot.slane %v299_v10, %v401_v11  ;;  %v428_v24 = vrot.slane %v299_v10, %v405_v12 }
  0x14   : > { %v354_v25 = vrot.slane %v298_v9, %v353_v13  ;;  %v358_v26 = vrot.slane %v298_v9, %v357_v14  ;;  %v376_v27 = vrot.slane %v299_v10, %v353_v13  ;;  %v380_v28 = vrot.slane %v299_v10, %v357_v14 }
  0x15   : > { %v450_v29 = vrot.slane %v298_v9, %v449_v15  ;;  %v454_v30 = vrot.slane %v298_v9, %v453_v16  ;;  %v472_v31 = vrot.slane %v299_v10, %v449_v15  ;;  %v476_v32 = vrot.slane %v299_v10, %v453_v16 }
  0x16   : > { %v319_v34 = vrot.slane %v309_v17, %v308_v7  ;;  %v323_v35 = vrot.slane %v313_v18, %v308_v7  ;;  %v340_v36 = vrot.slane %v330_v19, %v308_v7  ;;  %v344_v37 = vrot.slane %v334_v20, %v308_v7 }
  0x17   : > { %v412_v39 = vrot.slane %v402_v21, %v401_v11  ;;  %v416_v40 = vrot.slane %v406_v22, %v401_v11  ;;  %v434_v41 = vrot.slane %v424_v23, %v401_v11  ;;  %v438_v42 = vrot.slane %v428_v24, %v401_v11 }
  0x18   : > { %v364_v43 = vrot.slane %v354_v25, %v353_v13  ;;  %v368_v44 = vrot.slane %v358_v26, %v353_v13  ;;  %v386_v45 = vrot.slane %v376_v27, %v353_v13  ;;  %v390_v46 = vrot.slane %v380_v28, %v353_v13 }
  0x19   : > { %v460_v47 = vrot.slane %v450_v29, %v449_v15  ;;  %v464_v48 = vrot.slane %v454_v30, %v449_v15  ;;  %v482_v49 = vrot.slane %v472_v31, %v449_v15  ;;  %v486_v50 = vrot.slane %v476_v32, %v449_v15 }
  0x87   : > { %v303_v33 = vpop.permute.xlu0 %302  ;;  %v397_v38 = vpop.permute.xlu1 %396 }
  0x88   : > { %v324_v51 = vmul.f32 %v319_v34, %v303_v33  ;;  %v325_v52 = vmul.f32 %v323_v35, %v303_v33  ;;  %v345_v53 = vmul.f32 %v340_v36, %v303_v33  ;;  %v346_v54 = vmul.f32 %v344_v37, %v303_v33 }
  0x89   : > { %v417_v55 = vmul.f32 %v412_v39, %v397_v38  ;;  %v418_v56 = vmul.f32 %v416_v40, %v397_v38  ;;  %v439_v57 = vmul.f32 %v434_v41, %v397_v38  ;;  %v440_v58 = vmul.f32 %v438_v42, %v397_v38 }
  0x8c   : > { %v349_v59 = vpop.permute.xlu0 %348  ;;  %v445_v60 = vpop.permute.xlu1 %444 }
  0x8d   : > { %v369_v61 = vmul.f32 %v364_v43, %v349_v59  ;;  %v370_v62 = vmul.f32 %v368_v44, %v349_v59  ;;  %v391_v63 = vmul.f32 %v386_v45, %v349_v59  ;;  %v392_v0 = vmul.f32 %v390_v46, %v349_v59 }
  0x8e   : > { %v465_v1 = vmul.f32 %v460_v47, %v445_v60  ;;  %v466_v2 = vmul.f32 %v464_v48, %v445_v60  ;;  %v487_v3 = vmul.f32 %v482_v49, %v445_v60  ;;  %v488_v4 = vmul.f32 %v486_v50, %v445_v60 }
  0x8f   : > { %v371_v5 = vadd.f32 %v369_v61, %v324_v51  ;;  %v372_v6 = vadd.f32 %v370_v62, %v325_v52  ;;  %v393_v7 = vadd.f32 %v391_v63, %v345_v53  ;;  %v394_v8 = vadd.f32 %v392_v0, %v346_v54 }
  0x91   : > { %v419_v9 = vadd.f32 %v417_v55, %v371_v5  ;;  %v420_v10 = vadd.f32 %v418_v56, %v372_v6  ;;  %v441_v11 = vadd.f32 %v439_v57, %v393_v7  ;;  %v442_v12 = vadd.f32 %v440_v58, %v394_v8 }
  0x93   : > { %v467_v13 = vadd.f32 %v465_v1, %v419_v9  ;;  %v468_v14 = vadd.f32 %v466_v2, %v420_v10  ;;  %v489_v15 = vadd.f32 %v487_v3, %v441_v11  ;;  %v490_v16 = vadd.f32 %v488_v4, %v442_v12 }
  0x95   : > { %v493_v17 = vcombine.low %v467_v13, %v468_v14  ;;  %v501_v18 = vcombine.low %v489_v15, %v490_v16 }
  0x97   : > { %498 = vst.msk [vmem:[%s285_s30] sm:$0xff] %vm497_vm2, %v493_v17  ;;  %503 = vst.msk [vmem:[%s295_s7] sm:$0xff] %vm497_vm2, %v501_v18 }
  0x98 PF: > { %s15_s17 = sadd.s32 1, %s733_s17   ;;  %s817_s15 = smov %s729_s16 }
  0x99   : > { %p12_p5 = scmp.ge.s32.totalorder %s15_s17, 4   ;;  %s818_s16 = smov %s820_s18 }
  0x9b   :  { %14 = sbr.rel (!%p12_p5) target bundleno = 2 (0x2), region = 77 }

</bundles_post_ra>
